<compile_context>
chip_gen: v7x
topology: tpu7x:2x2x1
jax: 0.10.0
libtpu: 0.0.40
codegen_flags: <defaults>
</compile_context>

<pallas_src>
import jax
import jax.numpy as jnp
from jax.experimental import pallas as pl
from jax.experimental.pallas import tpu as pltpu

BN_EPS = 1e-3  # BatchNorm1d(..., eps=0.001)
_BF16_MAX = float(jnp.finfo(jnp.bfloat16).max)


def _round_up(v: int, m: int) -> int:
    return (v + m - 1) // m * m


def _pad2(a, rows: int, cols: int, dtype):
    """Zero-pad a 2-D array to (rows, cols) and cast."""
    out = jnp.zeros((rows, cols), dtype)
    return out.at[:a.shape[0], :a.shape[1]].set(a.astype(dtype))


# ----------------------------------------------------------------------------
# One-time weight preparation (hoisted out of the per-call hot path).
# ----------------------------------------------------------------------------
def prepare_params(layers, wm, bm):
    """Fold eval-mode BatchNorm into each Linear (in f32), pad output dims (and
    the hidden K dim of layers >= 1) to lane multiples, cast matmul weights to
    bf16, and stack all cov-projection weights into a single matrix."""
    n_hidden, n_output = wm.shape
    Hp = _round_up(n_hidden, 128)   # for large (compute-bound) hidden sizes on
    Np = _round_up(n_output, 128)   # v6e/v7x, multiples of 256 feed the MXU best

    layer_wb, wc_blocks = [], []
    for li, (wx, wc, b, g, be, rm, rv) in enumerate(layers):
        scale = g * jax.lax.rsqrt(rv + BN_EPS)          # fold kept in f32
        rows = wx.shape[0] if li == 0 else Hp           # layer 0: K = n_input unpadded
        layer_wb.append((
            _pad2(wx * scale, rows, Hp, jnp.bfloat16),              # Wx'
            _pad2((b - rm) * scale + be, 1, Hp, jnp.float32),       # b'
        ))
        wc_blocks.append(_pad2(wc * scale, wc.shape[0], Hp, jnp.bfloat16))
    wc_all = jnp.concatenate(wc_blocks, axis=1)         # (n_cov, n_layers * Hp)

    return {
        "wc_all": wc_all,
        "layers": layer_wb,
        "wm": _pad2(wm, Hp, Np, jnp.bfloat16),
        "bm": _pad2(bm, 1, Np, jnp.float32),
        "Hp": Hp, "Np": Np,
        "n_hidden": n_hidden, "n_output": n_output,
    }


# ----------------------------------------------------------------------------
# Kernel.
# ----------------------------------------------------------------------------
def _make_kernel(n_layers: int, hp: int):
    """Kernel for a fixed number of decoder layers (BN already folded)."""

    def kernel(x_ref, cov_ref, wc_ref, *rest):
        layer_refs = rest[:2 * n_layers]
        wm_ref = rest[2 * n_layers]
        bm_ref = rest[2 * n_layers + 1]
        ym_ref = rest[2 * n_layers + 2]

        # Cast activations to bf16 in-kernel (inputs arrive unpadded f32).
        x = x_ref[...].astype(jnp.bfloat16)
        cov = cov_ref[...].astype(jnp.bfloat16)

        # All layers' cov projections in a single MXU pass; keep bf16 so the
        # (TB, n_layers*Hp) intermediate costs half the VMEM while it stays live.
        covp = jnp.dot(cov, wc_ref[...],
                       preferred_element_type=jnp.float32).astype(jnp.bfloat16)

        h = x
        for li in range(n_layers):
            wx_ref, b_ref = layer_refs[2 * li], layer_refs[2 * li + 1]
            z = jnp.dot(h, wx_ref[...], preferred_element_type=jnp.float32)
            z = z + covp[:, li * hp:(li + 1) * hp] + b_ref[...]
            # Folded BN already applied; ReLU; Dropout is identity at eval.
            h = jnp.maximum(z, 0.0).astype(jnp.bfloat16)

        # Mean head: y_m = nan_to_num(Linear(h)); clamp to bf16-finite range so
        # the inf/nan sentinels survive the bf16 store, then write lane-dense.
        y_m = jnp.dot(h, wm_ref[...], preferred_element_type=jnp.float32) + bm_ref[...]
        y_m = jnp.nan_to_num(y_m, posinf=_BF16_MAX, neginf=-_BF16_MAX)
        y_m = jnp.clip(y_m, -_BF16_MAX, _BF16_MAX)
        ym_ref[...] = y_m.astype(jnp.bfloat16)

    return kernel


# ----------------------------------------------------------------------------
# Hot-path forward.
# ----------------------------------------------------------------------------
def encoder_decoder_forward(x, cov, prepared, varp, var_eps=1e-4, tb=512):
    """x: (B, n_input) f32, cov: (B, n_cov) f32, prepared: prepare_params(...)."""
    wc_all = prepared["wc_all"]
    layer_wb = prepared["layers"]
    wm_p, bm_p = prepared["wm"], prepared["bm"]
    Hp, Np = prepared["Hp"], prepared["Np"]
    n_output = prepared["n_output"]
    n_layers = len(layer_wb)

    B, n_input = x.shape
    n_cov = cov.shape[1]

    # ---- Batch tile: large tiles amortize per-step overhead (v5e/v6e), but
    # ensure >= 2 grid steps when possible so the "parallel" axis can shard
    # across v7x's two TensorCores.
    TB = min(tb, _round_up(B, 8))
    if B > 8 and _round_up(B, TB) // TB < 2:
        TB = max(8, _round_up(pl.cdiv(B, 2), 8))
    Bp = _round_up(B, TB)
    grid = (Bp // TB,)

    # ---- VMEM budget derived from the actual resident footprint.
    weight_arrays = [wc_all, wm_p, bm_p] + [a for pair in layer_wb for a in pair]
    weight_bytes = sum(int(a.size) * a.dtype.itemsize for a in weight_arrays)
    act_bytes = TB * (n_input * x.dtype.itemsize + n_cov * cov.dtype.itemsize + Np * 2)
    scratch_bytes = TB * (n_layers * Hp * 2 + Hp * 6 + Np * 4)
    need_single = weight_bytes + 2 * act_bytes + scratch_bytes      # Buffered(1) weights
    need_double = 2 * weight_bytes + 2 * act_bytes + scratch_bytes  # fallback path
    try:
        phys_vmem = pltpu.get_tpu_info().vmem_capacity_bytes        # generation-aware
    except Exception:
        phys_vmem = 64 << 20                                        # conservative: v7x
    # TODO(synk): if resident weights alone outgrow VMEM (very large n_hidden),
    # tile the hidden/K dimension over a second "arbitrary" grid axis instead.
    assert need_single < int(0.85 * phys_vmem), (
        "resident weight set + activation tiles exceed VMEM; tile the hidden dim")
    vmem_limit = int(min(max(need_double * 3 // 2, 32 << 20), int(0.85 * phys_vmem)))

    flat = [x, cov, wc_all]
    for wxp, bp in layer_wb:
        flat += [wxp, bp]
    flat += [wm_p, bm_p]

    def build_specs(single_buffer_weights):
        def resident(a):
            # Constant index_map -> block is fetched once; Buffered(1) drops the
            # redundant second buffer (halves weight VMEM, matters on v7x).
            if single_buffer_weights:
                return pl.BlockSpec(a.shape, lambda i: (0, 0),
                                    pipeline_mode=pl.Buffered(1))
            return pl.BlockSpec(a.shape, lambda i: (0, 0))

        in_specs = [
            pl.BlockSpec((TB, n_input), lambda i: (i, 0)),   # x tile (unpadded cols)
            pl.BlockSpec((TB, n_cov), lambda i: (i, 0)),     # cov tile (unpadded cols)
            resident(wc_all),
        ]
        for wxp, bp in layer_wb:
            in_specs += [resident(wxp), resident(bp)]
        in_specs += [resident(wm_p), resident(bm_p)]
        return in_specs

    def run(single_buffer_weights):
        out = pl.pallas_call(
            _make_kernel(n_layers, Hp),
            out_shape=jax.ShapeDtypeStruct((Bp, Np), jnp.bfloat16),
            grid=grid,
            in_specs=build_specs(single_buffer_weights),
            out_specs=pl.BlockSpec((TB, Np), lambda i: (i, 0)),
            compiler_params=pltpu.CompilerParams(
                dimension_semantics=("parallel",),   # batch tiles independent
                vmem_limit_bytes=vmem_limit,
            ),
        )(*flat)
        return jax.block_until_ready(out)

    try:
        ym_p = run(True)
    except Exception:
        # Older Pallas versions may not support pipeline_mode / Buffered(1);
        # fall back to default double-buffered weight blocks.
        ym_p = run(False)

    y_m = ym_p[:B, :n_output].astype(jnp.float32)
    # VarEncoder(mode='feature') is batch-invariant: compute once in the wrapper
    # instead of burning kernel store bandwidth on a broadcast write.
    y_v = jnp.broadcast_to(jnp.nan_to_num(jnp.exp(varp)) + var_eps, (B, n_output))
    return {"y_m": y_m, "y_v": y_v}


# ----------------------------------------------------------------------------
# Synthetic parameters + pure-JAX reference.
# ----------------------------------------------------------------------------
def make_params(key, n_input, n_cov, n_hidden, n_output, n_layers=3):
    """Deterministic synthetic parameters (shapes dictated by the torch module)."""
    dims = [n_input] + (n_layers - 1) * [n_hidden] + [n_hidden]
    keys = jax.random.split(key, 4 * n_layers + 3)
    layers = []
    k = 0
    for i in range(n_layers):
        d_in, d_out = dims[i], dims[i + 1]
        wx = 0.1 * jax.random.normal(keys[k], (d_in, d_out), jnp.float32); k += 1
        wc = 0.1 * jax.random.normal(keys[k], (n_cov, d_out), jnp.float32); k += 1
        b = 0.05 * jax.random.normal(keys[k], (1, d_out), jnp.float32); k += 1
        bn_k = jax.random.split(keys[k], 4); k += 1
        gamma = 1.0 + 0.1 * jax.random.normal(bn_k[0], (1, d_out), jnp.float32)
        beta = 0.05 * jax.random.normal(bn_k[1], (1, d_out), jnp.float32)
        rmean = 0.1 * jax.random.normal(bn_k[2], (1, d_out), jnp.float32)
        rvar = jax.random.uniform(bn_k[3], (1, d_out), jnp.float32, 0.5, 1.5)
        layers.append((wx, wc, b, gamma, beta, rmean, rvar))
    wm = 0.1 * jax.random.normal(keys[k], (n_hidden, n_output), jnp.float32); k += 1
    bm = 0.05 * jax.random.normal(keys[k], (1, n_output), jnp.float32); k += 1
    varp = 0.1 * jax.random.normal(keys[k], (1, n_output), jnp.float32); k += 1
    return layers, wm, bm, varp


def reference_forward(x, cov, layers, wm, bm, varp, var_eps=1e-4):
    """Pure-JAX f32 reference of the original (eval-mode) forward pass."""
    h = x
    for (wx, wc, b, g, be, rm, rv) in layers:
        z = h @ wx + cov @ wc + b
        z = (z - rm) / jnp.sqrt(rv + BN_EPS) * g + be
        h = jnp.maximum(z, 0.0)
    y_m = jnp.nan_to_num(h @ wm + bm)
    y_v = jnp.broadcast_to(jnp.nan_to_num(jnp.exp(varp)) + var_eps, y_m.shape)
    return y_m, y_v


if __name__ == "__main__":
    key = jax.random.PRNGKey(0)
    B, n_input, n_cov, n_hidden, n_output, n_layers = 8, 16, 3, 32, 8, 3

    k_x, k_c, k_p = jax.random.split(key, 3)
    x = jax.random.normal(k_x, (B, n_input), jnp.float32)
    cov = jax.random.normal(k_c, (B, n_cov), jnp.float32)
    layers, wm, bm, varp = make_params(k_p, n_input, n_cov, n_hidden, n_output, n_layers)

    prepared = prepare_params(layers, wm, bm)          # one-time, off the hot path
    out = encoder_decoder_forward(x, cov, prepared, varp)
    jax.block_until_ready(out)

    ref_m, ref_v = reference_forward(x, cov, layers, wm, bm, varp)
    assert out["y_m"].shape == (B, n_output) and out["y_v"].shape == (B, n_output)
    # bf16 MXU operands + bf16 y_m store (f32 accumulation) -> loose tolerance.
    assert jnp.allclose(out["y_m"], ref_m, rtol=5e-2, atol=5e-2), "y_m mismatch"
    assert jnp.allclose(out["y_v"], ref_v, rtol=1e-6, atol=1e-6), "y_v mismatch"

    print("KERNEL_OK")
</pallas_src>

<mosaic_0001>
module attributes {stable_mosaic.version = 11 : i64} {
  func.func @kernel(%arg0: i32, %arg1: memref<8x16xf32, #tpu.memory_space<vmem>>, %arg2: memref<8x3xf32, #tpu.memory_space<vmem>>, %arg3: memref<3x384xbf16, #tpu.memory_space<vmem>>, %arg4: memref<16x128xbf16, #tpu.memory_space<vmem>>, %arg5: memref<1x128xf32, #tpu.memory_space<vmem>>, %arg6: memref<128x128xbf16, #tpu.memory_space<vmem>>, %arg7: memref<1x128xf32, #tpu.memory_space<vmem>>, %arg8: memref<128x128xbf16, #tpu.memory_space<vmem>>, %arg9: memref<1x128xf32, #tpu.memory_space<vmem>>, %arg10: memref<128x128xbf16, #tpu.memory_space<vmem>>, %arg11: memref<1x128xf32, #tpu.memory_space<vmem>>, %arg12: memref<8x128xbf16, #tpu.memory_space<vmem>>) attributes {dimension_semantics = [#tpu.dimension_semantics<parallel>], iteration_bounds = array<i64: 1>, scalar_prefetch = 0 : i64, scratch_operands = 0 : i64, tpu.core_type = #tpu.core_type<tc>, window_params = [{transform_indices = @transform_0, window_bounds = array<i64: 8, 16>}, {transform_indices = @transform_1, window_bounds = array<i64: 8, 3>}, {pipeline_mode = #tpu.pipeline_mode<synchronous>, transform_indices = @transform_2, window_bounds = array<i64: 3, 384>}, {pipeline_mode = #tpu.pipeline_mode<synchronous>, transform_indices = @transform_3, window_bounds = array<i64: 16, 128>}, {pipeline_mode = #tpu.pipeline_mode<synchronous>, transform_indices = @transform_4, window_bounds = array<i64: 1, 128>}, {pipeline_mode = #tpu.pipeline_mode<synchronous>, transform_indices = @transform_5, window_bounds = array<i64: 128, 128>}, {pipeline_mode = #tpu.pipeline_mode<synchronous>, transform_indices = @transform_6, window_bounds = array<i64: 1, 128>}, {pipeline_mode = #tpu.pipeline_mode<synchronous>, transform_indices = @transform_7, window_bounds = array<i64: 128, 128>}, {pipeline_mode = #tpu.pipeline_mode<synchronous>, transform_indices = @transform_8, window_bounds = array<i64: 1, 128>}, {pipeline_mode = #tpu.pipeline_mode<synchronous>, transform_indices = @transform_9, window_bounds = array<i64: 128, 128>}, {pipeline_mode = #tpu.pipeline_mode<synchronous>, transform_indices = @transform_10, window_bounds = array<i64: 1, 128>}, {transform_indices = @transform_11, window_bounds = array<i64: 8, 128>}]} {
    %c0 = arith.constant 0 : index
    %c0_0 = arith.constant 0 : index
    %0 = vector.load %arg1[%c0, %c0_0] : memref<8x16xf32, #tpu.memory_space<vmem>>, vector<8x16xf32>
    %1 = arith.truncf %0 : vector<8x16xf32> to vector<8x16xbf16>
    %c0_1 = arith.constant 0 : index
    %c0_2 = arith.constant 0 : index
    %2 = vector.load %arg2[%c0_1, %c0_2] : memref<8x3xf32, #tpu.memory_space<vmem>>, vector<8x3xf32>
    %3 = arith.truncf %2 : vector<8x3xf32> to vector<8x3xbf16>
    %c0_3 = arith.constant 0 : index
    %c0_4 = arith.constant 0 : index
    %4 = vector.load %arg3[%c0_3, %c0_4] : memref<3x384xbf16, #tpu.memory_space<vmem>>, vector<3x384xbf16>
    %cst = arith.constant dense<0.000000e+00> : vector<8x384xf32>
    %5 = tpu.matmul %3, %4, %cst {dimension_numbers = #tpu.dot_dimension_numbers<[1], [0], [0], [1], [0, 0, 1, 1], [], []>} : vector<8x3xbf16>, vector<3x384xbf16>, vector<8x384xf32> -> vector<8x384xf32>
    %6 = arith.truncf %5 : vector<8x384xf32> to vector<8x384xbf16>
    %c0_5 = arith.constant 0 : index
    %c0_6 = arith.constant 0 : index
    %7 = vector.load %arg4[%c0_5, %c0_6] : memref<16x128xbf16, #tpu.memory_space<vmem>>, vector<16x128xbf16>
    %cst_7 = arith.constant dense<0.000000e+00> : vector<8x128xf32>
    %8 = tpu.matmul %1, %7, %cst_7 {dimension_numbers = #tpu.dot_dimension_numbers<[1], [0], [0], [1], [0, 0, 1, 1], [], []>} : vector<8x16xbf16>, vector<16x128xbf16>, vector<8x128xf32> -> vector<8x128xf32>
    %9 = vector.extract_strided_slice %6 {offsets = [0, 0], sizes = [8, 128], strides = [1, 1]} : vector<8x384xbf16> to vector<8x128xbf16>
    %10 = arith.extf %9 : vector<8x128xbf16> to vector<8x128xf32>
    %11 = arith.addf %8, %10 : vector<8x128xf32>
    %c0_8 = arith.constant 0 : index
    %c0_9 = arith.constant 0 : index
    %12 = vector.load %arg5[%c0_8, %c0_9] : memref<1x128xf32, #tpu.memory_space<vmem>>, vector<1x128xf32>
    %13 = vector.broadcast %12 : vector<1x128xf32> to vector<8x128xf32>
    %14 = arith.addf %11, %13 : vector<8x128xf32>
    %cst_10 = arith.constant 0.000000e+00 : f32
    %15 = vector.broadcast %cst_10 : f32 to vector<8x128xf32>
    %16 = arith.maximumf %14, %15 : vector<8x128xf32>
    %17 = arith.truncf %16 : vector<8x128xf32> to vector<8x128xbf16>
    %c0_11 = arith.constant 0 : index
    %c0_12 = arith.constant 0 : index
    %18 = vector.load %arg6[%c0_11, %c0_12] : memref<128x128xbf16, #tpu.memory_space<vmem>>, vector<128x128xbf16>
    %cst_13 = arith.constant dense<0.000000e+00> : vector<8x128xf32>
    %19 = tpu.matmul %17, %18, %cst_13 {dimension_numbers = #tpu.dot_dimension_numbers<[1], [0], [0], [1], [0, 0, 1, 1], [], []>} : vector<8x128xbf16>, vector<128x128xbf16>, vector<8x128xf32> -> vector<8x128xf32>
    %20 = vector.extract_strided_slice %6 {offsets = [0, 128], sizes = [8, 128], strides = [1, 1]} : vector<8x384xbf16> to vector<8x128xbf16>
    %21 = arith.extf %20 : vector<8x128xbf16> to vector<8x128xf32>
    %22 = arith.addf %19, %21 : vector<8x128xf32>
    %c0_14 = arith.constant 0 : index
    %c0_15 = arith.constant 0 : index
    %23 = vector.load %arg7[%c0_14, %c0_15] : memref<1x128xf32, #tpu.memory_space<vmem>>, vector<1x128xf32>
    %24 = vector.broadcast %23 : vector<1x128xf32> to vector<8x128xf32>
    %25 = arith.addf %22, %24 : vector<8x128xf32>
    %cst_16 = arith.constant 0.000000e+00 : f32
    %26 = vector.broadcast %cst_16 : f32 to vector<8x128xf32>
    %27 = arith.maximumf %25, %26 : vector<8x128xf32>
    %28 = arith.truncf %27 : vector<8x128xf32> to vector<8x128xbf16>
    %c0_17 = arith.constant 0 : index
    %c0_18 = arith.constant 0 : index
    %29 = vector.load %arg8[%c0_17, %c0_18] : memref<128x128xbf16, #tpu.memory_space<vmem>>, vector<128x128xbf16>
    %cst_19 = arith.constant dense<0.000000e+00> : vector<8x128xf32>
    %30 = tpu.matmul %28, %29, %cst_19 {dimension_numbers = #tpu.dot_dimension_numbers<[1], [0], [0], [1], [0, 0, 1, 1], [], []>} : vector<8x128xbf16>, vector<128x128xbf16>, vector<8x128xf32> -> vector<8x128xf32>
    %31 = vector.extract_strided_slice %6 {offsets = [0, 256], sizes = [8, 128], strides = [1, 1]} : vector<8x384xbf16> to vector<8x128xbf16>
    %32 = arith.extf %31 : vector<8x128xbf16> to vector<8x128xf32>
    %33 = arith.addf %30, %32 : vector<8x128xf32>
    %c0_20 = arith.constant 0 : index
    %c0_21 = arith.constant 0 : index
    %34 = vector.load %arg9[%c0_20, %c0_21] : memref<1x128xf32, #tpu.memory_space<vmem>>, vector<1x128xf32>
    %35 = vector.broadcast %34 : vector<1x128xf32> to vector<8x128xf32>
    %36 = arith.addf %33, %35 : vector<8x128xf32>
    %cst_22 = arith.constant 0.000000e+00 : f32
    %37 = vector.broadcast %cst_22 : f32 to vector<8x128xf32>
    %38 = arith.maximumf %36, %37 : vector<8x128xf32>
    %39 = arith.truncf %38 : vector<8x128xf32> to vector<8x128xbf16>
    %c0_23 = arith.constant 0 : index
    %c0_24 = arith.constant 0 : index
    %40 = vector.load %arg10[%c0_23, %c0_24] : memref<128x128xbf16, #tpu.memory_space<vmem>>, vector<128x128xbf16>
    %cst_25 = arith.constant dense<0.000000e+00> : vector<8x128xf32>
    %41 = tpu.matmul %39, %40, %cst_25 {dimension_numbers = #tpu.dot_dimension_numbers<[1], [0], [0], [1], [0, 0, 1, 1], [], []>} : vector<8x128xbf16>, vector<128x128xbf16>, vector<8x128xf32> -> vector<8x128xf32>
    %c0_26 = arith.constant 0 : index
    %c0_27 = arith.constant 0 : index
    %42 = vector.load %arg11[%c0_26, %c0_27] : memref<1x128xf32, #tpu.memory_space<vmem>>, vector<1x128xf32>
    %43 = vector.broadcast %42 : vector<1x128xf32> to vector<8x128xf32>
    %44 = arith.addf %41, %43 : vector<8x128xf32>
    %cst_28 = arith.constant -3.38953139E+38 : f32
    %cst_29 = arith.constant 3.38953139E+38 : f32
    %45 = arith.cmpf one, %44, %44 : vector<8x128xf32>
    %cst_30 = arith.constant 0.000000e+00 : f32
    %46 = vector.broadcast %cst_30 : f32 to vector<8x128xf32>
    %47 = arith.select %45, %46, %44 : vector<8x128xi1>, vector<8x128xf32>
    %cst_31 = arith.constant 0x7F800000 : f32
    %48 = vector.broadcast %cst_31 : f32 to vector<8x128xf32>
    %49 = arith.cmpf oeq, %47, %48 : vector<8x128xf32>
    %50 = vector.broadcast %cst_29 : f32 to vector<8x128xf32>
    %51 = arith.select %49, %50, %47 : vector<8x128xi1>, vector<8x128xf32>
    %cst_32 = arith.constant 0xFF800000 : f32
    %52 = vector.broadcast %cst_32 : f32 to vector<8x128xf32>
    %53 = arith.cmpf oeq, %51, %52 : vector<8x128xf32>
    %54 = vector.broadcast %cst_28 : f32 to vector<8x128xf32>
    %55 = arith.select %53, %54, %51 : vector<8x128xi1>, vector<8x128xf32>
    %cst_33 = arith.constant -3.38953139E+38 : f32
    %cst_34 = arith.constant 3.38953139E+38 : f32
    %56 = vector.broadcast %cst_33 : f32 to vector<8x128xf32>
    %57 = arith.maximumf %56, %55 : vector<8x128xf32>
    %58 = vector.broadcast %cst_34 : f32 to vector<8x128xf32>
    %59 = arith.minimumf %58, %57 : vector<8x128xf32>
    %60 = arith.truncf %59 : vector<8x128xf32> to vector<8x128xbf16>
    %c0_35 = arith.constant 0 : index
    %c0_36 = arith.constant 0 : index
    %61 = vector.load %arg12[%c0_35, %c0_36] : memref<8x128xbf16, #tpu.memory_space<vmem>>, vector<8x128xbf16>
    tpu.vector_store %arg12[%c0_35, %c0_36], %60 {strides = array<i32>} : memref<8x128xbf16, #tpu.memory_space<vmem>>, vector<8x128xbf16>,
    return
  }
  func.func @transform_0(%arg0: i32) -> (i32, i32) {
    %c0_i32 = arith.constant 0 : i32
    %c0_i32_0 = arith.constant 0 : i32
    return %arg0, %c0_i32 : i32, i32
  }
  func.func @transform_1(%arg0: i32) -> (i32, i32) {
    %c0_i32 = arith.constant 0 : i32
    %c0_i32_0 = arith.constant 0 : i32
    return %arg0, %c0_i32 : i32, i32
  }
  func.func @transform_2(%arg0: i32) -> (i32, i32) {
    %c0_i32 = arith.constant 0 : i32
    %c0_i32_0 = arith.constant 0 : i32
    %c0_i32_1 = arith.constant 0 : i32
    return %c0_i32, %c0_i32_0 : i32, i32
  }
  func.func @transform_3(%arg0: i32) -> (i32, i32) {
    %c0_i32 = arith.constant 0 : i32
    %c0_i32_0 = arith.constant 0 : i32
    %c0_i32_1 = arith.constant 0 : i32
    return %c0_i32, %c0_i32_0 : i32, i32
  }
  func.func @transform_4(%arg0: i32) -> (i32, i32) {
    %c0_i32 = arith.constant 0 : i32
    %c0_i32_0 = arith.constant 0 : i32
    %c0_i32_1 = arith.constant 0 : i32
    return %c0_i32, %c0_i32_0 : i32, i32
  }
  func.func @transform_5(%arg0: i32) -> (i32, i32) {
    %c0_i32 = arith.constant 0 : i32
    %c0_i32_0 = arith.constant 0 : i32
    %c0_i32_1 = arith.constant 0 : i32
    return %c0_i32, %c0_i32_0 : i32, i32
  }
  func.func @transform_6(%arg0: i32) -> (i32, i32) {
    %c0_i32 = arith.constant 0 : i32
    %c0_i32_0 = arith.constant 0 : i32
    %c0_i32_1 = arith.constant 0 : i32
    return %c0_i32, %c0_i32_0 : i32, i32
  }
  func.func @transform_7(%arg0: i32) -> (i32, i32) {
    %c0_i32 = arith.constant 0 : i32
    %c0_i32_0 = arith.constant 0 : i32
    %c0_i32_1 = arith.constant 0 : i32
    return %c0_i32, %c0_i32_0 : i32, i32
  }
  func.func @transform_8(%arg0: i32) -> (i32, i32) {
    %c0_i32 = arith.constant 0 : i32
    %c0_i32_0 = arith.constant 0 : i32
    %c0_i32_1 = arith.constant 0 : i32
    return %c0_i32, %c0_i32_0 : i32, i32
  }
  func.func @transform_9(%arg0: i32) -> (i32, i32) {
    %c0_i32 = arith.constant 0 : i32
    %c0_i32_0 = arith.constant 0 : i32
    %c0_i32_1 = arith.constant 0 : i32
    return %c0_i32, %c0_i32_0 : i32, i32
  }
  func.func @transform_10(%arg0: i32) -> (i32, i32) {
    %c0_i32 = arith.constant 0 : i32
    %c0_i32_0 = arith.constant 0 : i32
    %c0_i32_1 = arith.constant 0 : i32
    return %c0_i32, %c0_i32_0 : i32, i32
  }
  func.func @transform_11(%arg0: i32) -> (i32, i32) {
    %c0_i32 = arith.constant 0 : i32
    %c0_i32_0 = arith.constant 0 : i32
    return %arg0, %c0_i32 : i32, i32
  }
}

module attributes {stable_mosaic.version = 11 : i64} {
  func.func @kernel(%arg0: i32, %arg1: memref<8x16xf32, #tpu.memory_space<vmem>>, %arg2: memref<8x3xf32, #tpu.memory_space<vmem>>, %arg3: memref<3x384xbf16, #tpu.memory_space<vmem>>, %arg4: memref<16x128xbf16, #tpu.memory_space<vmem>>, %arg5: memref<1x128xf32, #tpu.memory_space<vmem>>, %arg6: memref<128x128xbf16, #tpu.memory_space<vmem>>, %arg7: memref<1x128xf32, #tpu.memory_space<vmem>>, %arg8: memref<128x128xbf16, #tpu.memory_space<vmem>>, %arg9: memref<1x128xf32, #tpu.memory_space<vmem>>, %arg10: memref<128x128xbf16, #tpu.memory_space<vmem>>, %arg11: memref<1x128xf32, #tpu.memory_space<vmem>>, %arg12: memref<8x128xbf16, #tpu.memory_space<vmem>>) attributes {dimension_semantics = [#tpu.dimension_semantics<parallel>], iteration_bounds = array<i64: 1>, scalar_prefetch = 0 : i64, scratch_operands = 0 : i64, tpu.core_type = #tpu.core_type<tc>, window_params = [{transform_indices = @transform_0, window_bounds = array<i64: 8, 16>}, {transform_indices = @transform_1, window_bounds = array<i64: 8, 3>}, {pipeline_mode = #tpu.pipeline_mode<synchronous>, transform_indices = @transform_2, window_bounds = array<i64: 3, 384>}, {pipeline_mode = #tpu.pipeline_mode<synchronous>, transform_indices = @transform_3, window_bounds = array<i64: 16, 128>}, {pipeline_mode = #tpu.pipeline_mode<synchronous>, transform_indices = @transform_4, window_bounds = array<i64: 1, 128>}, {pipeline_mode = #tpu.pipeline_mode<synchronous>, transform_indices = @transform_5, window_bounds = array<i64: 128, 128>}, {pipeline_mode = #tpu.pipeline_mode<synchronous>, transform_indices = @transform_6, window_bounds = array<i64: 1, 128>}, {pipeline_mode = #tpu.pipeline_mode<synchronous>, transform_indices = @transform_7, window_bounds = array<i64: 128, 128>}, {pipeline_mode = #tpu.pipeline_mode<synchronous>, transform_indices = @transform_8, window_bounds = array<i64: 1, 128>}, {pipeline_mode = #tpu.pipeline_mode<synchronous>, transform_indices = @transform_9, window_bounds = array<i64: 128, 128>}, {pipeline_mode = #tpu.pipeline_mode<synchronous>, transform_indices = @transform_10, window_bounds = array<i64: 1, 128>}, {transform_indices = @transform_11, window_bounds = array<i64: 8, 128>}]} {
    %c0 = arith.constant 0 : index
    %c0_0 = arith.constant 0 : index
    %0 = vector.load %arg1[%c0, %c0_0] : memref<8x16xf32, #tpu.memory_space<vmem>>, vector<8x16xf32>
    %1 = arith.truncf %0 : vector<8x16xf32> to vector<8x16xbf16>
    %c0_1 = arith.constant 0 : index
    %c0_2 = arith.constant 0 : index
    %2 = vector.load %arg2[%c0_1, %c0_2] : memref<8x3xf32, #tpu.memory_space<vmem>>, vector<8x3xf32>
    %3 = arith.truncf %2 : vector<8x3xf32> to vector<8x3xbf16>
    %c0_3 = arith.constant 0 : index
    %c0_4 = arith.constant 0 : index
    %4 = vector.load %arg3[%c0_3, %c0_4] : memref<3x384xbf16, #tpu.memory_space<vmem>>, vector<3x384xbf16>
    %cst = arith.constant dense<0.000000e+00> : vector<8x384xf32>
    %5 = tpu.matmul %3, %4, %cst {dimension_numbers = #tpu.dot_dimension_numbers<[1], [0], [0], [1], [0, 0, 1, 1], [], []>} : vector<8x3xbf16>, vector<3x384xbf16>, vector<8x384xf32> -> vector<8x384xf32>
    %6 = arith.truncf %5 : vector<8x384xf32> to vector<8x384xbf16>
    %c0_5 = arith.constant 0 : index
    %c0_6 = arith.constant 0 : index
    %7 = vector.load %arg4[%c0_5, %c0_6] : memref<16x128xbf16, #tpu.memory_space<vmem>>, vector<16x128xbf16>
    %cst_7 = arith.constant dense<0.000000e+00> : vector<8x128xf32>
    %8 = tpu.matmul %1, %7, %cst_7 {dimension_numbers = #tpu.dot_dimension_numbers<[1], [0], [0], [1], [0, 0, 1, 1], [], []>} : vector<8x16xbf16>, vector<16x128xbf16>, vector<8x128xf32> -> vector<8x128xf32>
    %9 = vector.extract_strided_slice %6 {offsets = [0, 0], sizes = [8, 128], strides = [1, 1]} : vector<8x384xbf16> to vector<8x128xbf16>
    %10 = arith.extf %9 : vector<8x128xbf16> to vector<8x128xf32>
    %11 = arith.addf %8, %10 : vector<8x128xf32>
    %c0_8 = arith.constant 0 : index
    %c0_9 = arith.constant 0 : index
    %12 = vector.load %arg5[%c0_8, %c0_9] : memref<1x128xf32, #tpu.memory_space<vmem>>, vector<1x128xf32>
    %13 = vector.broadcast %12 : vector<1x128xf32> to vector<8x128xf32>
    %14 = arith.addf %11, %13 : vector<8x128xf32>
    %cst_10 = arith.constant 0.000000e+00 : f32
    %15 = vector.broadcast %cst_10 : f32 to vector<8x128xf32>
    %16 = arith.maximumf %14, %15 : vector<8x128xf32>
    %17 = arith.truncf %16 : vector<8x128xf32> to vector<8x128xbf16>
    %c0_11 = arith.constant 0 : index
    %c0_12 = arith.constant 0 : index
    %18 = vector.load %arg6[%c0_11, %c0_12] : memref<128x128xbf16, #tpu.memory_space<vmem>>, vector<128x128xbf16>
    %cst_13 = arith.constant dense<0.000000e+00> : vector<8x128xf32>
    %19 = tpu.matmul %17, %18, %cst_13 {dimension_numbers = #tpu.dot_dimension_numbers<[1], [0], [0], [1], [0, 0, 1, 1], [], []>} : vector<8x128xbf16>, vector<128x128xbf16>, vector<8x128xf32> -> vector<8x128xf32>
    %20 = vector.extract_strided_slice %6 {offsets = [0, 128], sizes = [8, 128], strides = [1, 1]} : vector<8x384xbf16> to vector<8x128xbf16>
    %21 = arith.extf %20 : vector<8x128xbf16> to vector<8x128xf32>
    %22 = arith.addf %19, %21 : vector<8x128xf32>
    %c0_14 = arith.constant 0 : index
    %c0_15 = arith.constant 0 : index
    %23 = vector.load %arg7[%c0_14, %c0_15] : memref<1x128xf32, #tpu.memory_space<vmem>>, vector<1x128xf32>
    %24 = vector.broadcast %23 : vector<1x128xf32> to vector<8x128xf32>
    %25 = arith.addf %22, %24 : vector<8x128xf32>
    %cst_16 = arith.constant 0.000000e+00 : f32
    %26 = vector.broadcast %cst_16 : f32 to vector<8x128xf32>
    %27 = arith.maximumf %25, %26 : vector<8x128xf32>
    %28 = arith.truncf %27 : vector<8x128xf32> to vector<8x128xbf16>
    %c0_17 = arith.constant 0 : index
    %c0_18 = arith.constant 0 : index
    %29 = vector.load %arg8[%c0_17, %c0_18] : memref<128x128xbf16, #tpu.memory_space<vmem>>, vector<128x128xbf16>
    %cst_19 = arith.constant dense<0.000000e+00> : vector<8x128xf32>
    %30 = tpu.matmul %28, %29, %cst_19 {dimension_numbers = #tpu.dot_dimension_numbers<[1], [0], [0], [1], [0, 0, 1, 1], [], []>} : vector<8x128xbf16>, vector<128x128xbf16>, vector<8x128xf32> -> vector<8x128xf32>
    %31 = vector.extract_strided_slice %6 {offsets = [0, 256], sizes = [8, 128], strides = [1, 1]} : vector<8x384xbf16> to vector<8x128xbf16>
    %32 = arith.extf %31 : vector<8x128xbf16> to vector<8x128xf32>
    %33 = arith.addf %30, %32 : vector<8x128xf32>
    %c0_20 = arith.constant 0 : index
    %c0_21 = arith.constant 0 : index
    %34 = vector.load %arg9[%c0_20, %c0_21] : memref<1x128xf32, #tpu.memory_space<vmem>>, vector<1x128xf32>
    %35 = vector.broadcast %34 : vector<1x128xf32> to vector<8x128xf32>
    %36 = arith.addf %33, %35 : vector<8x128xf32>
    %cst_22 = arith.constant 0.000000e+00 : f32
    %37 = vector.broadcast %cst_22 : f32 to vector<8x128xf32>
    %38 = arith.maximumf %36, %37 : vector<8x128xf32>
    %39 = arith.truncf %38 : vector<8x128xf32> to vector<8x128xbf16>
    %c0_23 = arith.constant 0 : index
    %c0_24 = arith.constant 0 : index
    %40 = vector.load %arg10[%c0_23, %c0_24] : memref<128x128xbf16, #tpu.memory_space<vmem>>, vector<128x128xbf16>
    %cst_25 = arith.constant dense<0.000000e+00> : vector<8x128xf32>
    %41 = tpu.matmul %39, %40, %cst_25 {dimension_numbers = #tpu.dot_dimension_numbers<[1], [0], [0], [1], [0, 0, 1, 1], [], []>} : vector<8x128xbf16>, vector<128x128xbf16>, vector<8x128xf32> -> vector<8x128xf32>
    %c0_26 = arith.constant 0 : index
    %c0_27 = arith.constant 0 : index
    %42 = vector.load %arg11[%c0_26, %c0_27] : memref<1x128xf32, #tpu.memory_space<vmem>>, vector<1x128xf32>
    %43 = vector.broadcast %42 : vector<1x128xf32> to vector<8x128xf32>
    %44 = arith.addf %41, %43 : vector<8x128xf32>
    %cst_28 = arith.constant -3.38953139E+38 : f32
    %cst_29 = arith.constant 3.38953139E+38 : f32
    %45 = arith.cmpf one, %44, %44 : vector<8x128xf32>
    %cst_30 = arith.constant 0.000000e+00 : f32
    %46 = vector.broadcast %cst_30 : f32 to vector<8x128xf32>
    %47 = arith.select %45, %46, %44 : vector<8x128xi1>, vector<8x128xf32>
    %cst_31 = arith.constant 0x7F800000 : f32
    %48 = vector.broadcast %cst_31 : f32 to vector<8x128xf32>
    %49 = arith.cmpf oeq, %47, %48 : vector<8x128xf32>
    %50 = vector.broadcast %cst_29 : f32 to vector<8x128xf32>
    %51 = arith.select %49, %50, %47 : vector<8x128xi1>, vector<8x128xf32>
    %cst_32 = arith.constant 0xFF800000 : f32
    %52 = vector.broadcast %cst_32 : f32 to vector<8x128xf32>
    %53 = arith.cmpf oeq, %51, %52 : vector<8x128xf32>
    %54 = vector.broadcast %cst_28 : f32 to vector<8x128xf32>
    %55 = arith.select %53, %54, %51 : vector<8x128xi1>, vector<8x128xf32>
    %cst_33 = arith.constant -3.38953139E+38 : f32
    %cst_34 = arith.constant 3.38953139E+38 : f32
    %56 = vector.broadcast %cst_33 : f32 to vector<8x128xf32>
    %57 = arith.maximumf %56, %55 : vector<8x128xf32>
    %58 = vector.broadcast %cst_34 : f32 to vector<8x128xf32>
    %59 = arith.minimumf %58, %57 : vector<8x128xf32>
    %60 = arith.truncf %59 : vector<8x128xf32> to vector<8x128xbf16>
    %c0_35 = arith.constant 0 : index
    %c0_36 = arith.constant 0 : index
    %61 = vector.load %arg12[%c0_35, %c0_36] : memref<8x128xbf16, #tpu.memory_space<vmem>>, vector<8x128xbf16>
    tpu.vector_store %arg12[%c0_35, %c0_36], %60 {strides = array<i32>} : memref<8x128xbf16, #tpu.memory_space<vmem>>, vector<8x128xbf16>,
    return
  }
  func.func @transform_0(%arg0: i32) -> (i32, i32) {
    %c0_i32 = arith.constant 0 : i32
    %c0_i32_0 = arith.constant 0 : i32
    return %arg0, %c0_i32 : i32, i32
  }
  func.func @transform_1(%arg0: i32) -> (i32, i32) {
    %c0_i32 = arith.constant 0 : i32
    %c0_i32_0 = arith.constant 0 : i32
    return %arg0, %c0_i32 : i32, i32
  }
  func.func @transform_2(%arg0: i32) -> (i32, i32) {
    %c0_i32 = arith.constant 0 : i32
    %c0_i32_0 = arith.constant 0 : i32
    %c0_i32_1 = arith.constant 0 : i32
    return %c0_i32, %c0_i32_0 : i32, i32
  }
  func.func @transform_3(%arg0: i32) -> (i32, i32) {
    %c0_i32 = arith.constant 0 : i32
    %c0_i32_0 = arith.constant 0 : i32
    %c0_i32_1 = arith.constant 0 : i32
    return %c0_i32, %c0_i32_0 : i32, i32
  }
  func.func @transform_4(%arg0: i32) -> (i32, i32) {
    %c0_i32 = arith.constant 0 : i32
    %c0_i32_0 = arith.constant 0 : i32
    %c0_i32_1 = arith.constant 0 : i32
    return %c0_i32, %c0_i32_0 : i32, i32
  }
  func.func @transform_5(%arg0: i32) -> (i32, i32) {
    %c0_i32 = arith.constant 0 : i32
    %c0_i32_0 = arith.constant 0 : i32
    %c0_i32_1 = arith.constant 0 : i32
    return %c0_i32, %c0_i32_0 : i32, i32
  }
  func.func @transform_6(%arg0: i32) -> (i32, i32) {
    %c0_i32 = arith.constant 0 : i32
    %c0_i32_0 = arith.constant 0 : i32
    %c0_i32_1 = arith.constant 0 : i32
    return %c0_i32, %c0_i32_0 : i32, i32
  }
  func.func @transform_7(%arg0: i32) -> (i32, i32) {
    %c0_i32 = arith.constant 0 : i32
    %c0_i32_0 = arith.constant 0 : i32
    %c0_i32_1 = arith.constant 0 : i32
    return %c0_i32, %c0_i32_0 : i32, i32
  }
  func.func @transform_8(%arg0: i32) -> (i32, i32) {
    %c0_i32 = arith.constant 0 : i32
    %c0_i32_0 = arith.constant 0 : i32
    %c0_i32_1 = arith.constant 0 : i32
    return %c0_i32, %c0_i32_0 : i32, i32
  }
  func.func @transform_9(%arg0: i32) -> (i32, i32) {
    %c0_i32 = arith.constant 0 : i32
    %c0_i32_0 = arith.constant 0 : i32
    %c0_i32_1 = arith.constant 0 : i32
    return %c0_i32, %c0_i32_0 : i32, i32
  }
  func.func @transform_10(%arg0: i32) -> (i32, i32) {
    %c0_i32 = arith.constant 0 : i32
    %c0_i32_0 = arith.constant 0 : i32
    %c0_i32_1 = arith.constant 0 : i32
    return %c0_i32, %c0_i32_0 : i32, i32
  }
  func.func @transform_11(%arg0: i32) -> (i32, i32) {
    %c0_i32 = arith.constant 0 : i32
    %c0_i32_0 = arith.constant 0 : i32
    return %arg0, %c0_i32 : i32, i32
  }
}

</mosaic_0001>

<bundles_post_ra>
// kernel: tpu_custom_call.1
= control target key start
LH: loop header
LB: loop body
LE: loop exit
PB: predicated region body
PF: predicated region fallthrough
CT: control target
= control target key end

     0   :  { %16 = vsyncpa [#allocation3], 0  ;;  %s1139_s0 = inlined_call_operand.vmem [shape: f32[8,16], index: 0, kind: input, shape index: {}]   ;;  %s1140_s1 = inlined_call_operand.vmem [shape: f32[8,3], index: 1, kind: input, shape index: {}]   ;;  %s1141_s2 = inlined_call_operand.hbm [shape: bf16[3,384], index: 2, kind: input, shape index: {}]   ;;  %s1142_s3 = inlined_call_operand.vmem [shape: bf16[16,128], index: 3, kind: input, shape index: {}]   ;;  %s1143_s4 = inlined_call_operand.vmem [shape: f32[1,128], index: 4, kind: input, shape index: {}]   ;;  %s1144_s5 = inlined_call_operand.hbm [shape: bf16[128,128], index: 5, kind: input, shape index: {}]   ;;  %s1145_s6 = inlined_call_operand.vmem [shape: f32[1,128], index: 6, kind: input, shape index: {}]   ;;  %s1146_s7 = inlined_call_operand.hbm [shape: bf16[128,128], index: 7, kind: input, shape index: {}]   ;;  %s1147_s8 = inlined_call_operand.vmem [shape: f32[1,128], index: 8, kind: input, shape index: {}]   ;;  %s1148_s9 = inlined_call_operand.hbm [shape: bf16[128,128], index: 9, kind: input, shape index: {}]   ;;  %s1149_s10 = inlined_call_operand.vmem [shape: f32[1,128], index: 10, kind: input, shape index: {}]   ;;  %s1150_s11 = inlined_call_operand.hbm [shape: bf16[8,128], index: 11, kind: output, shape index: {}]  }
   0x1   :  { %17 = vsyncpa [#allocation6], 0 }
   0x2   :  { %18 = vsyncpa [#allocation9], 0 }
   0x3   :  { %19 = vsyncpa [#allocation4], 0  ;;  %s939_s17 = smov [#allocation5]   ;;  %s821_s21 = scalar_lea.hbm %s1144_s5, 1024 }
   0x4   :  { %s43_s18 = sshll.u32 %s939_s17, 4  ;;  %p822_p0 = scmp.ne.s32.totalorder %s1144_s5, %s821_s21  ;;  %s44_s18 = int_to_ptr.vmem [resolvable:$true] %s43_s18 }
   0x5   :  { %p825_p1 = scmp.lt.u32.totalorder %s821_s21, %s1144_s5 }
   0x7   :  { %p827_p2 = pnand %p825_p1, %p822_p0 }
   0x9   :  { %830 = shalt.err (!%p827_p2)
}
   0xa   :  { %s831_s26 = scalar_lea.vmem %s44_s18, 1024  ;;  %p836_p4 = scmp.lt.s32.totalorder %s44_s18, %s44_s18 }
   0xb   :  { %p832_p3 = scmp.ne.s32.totalorder %s44_s18, %s831_s26  ;;  %p837_p5 = scmp.lt.s32.totalorder %s831_s26, %s831_s26 }
   0xd   :  { %p838_p6 = por %p837_p5, %p836_p4 }
   0xf   :  { %p839_p7 = pnand %p838_p6, %p832_p3 }
  0x11   :  { %842 = shalt.err (!%p839_p7)
}
  0x12   :  { %s940_s27 = smov 64   ;;  %s941_s28 = smov 4  }
  0x13   :  { %49 = dma.hbm_to_vmem [thread:$0]  %s1144_s5, 1024, %s44_s18, [#allocation6], %s940_s27, %s940_s27, %s941_s28  }
  0x14   :  { %s942_s12 = smov [#allocation2]   ;;  %s943_s14 = smov [#allocation7]  }
  0x15   :  { %s30_s13 = sshll.u32 %s942_s12, 4  ;;  %s57_s15 = sshll.u32 %s943_s14, 4  ;;  %s31_s13 = int_to_ptr.vmem [resolvable:$true] %s30_s13  ;;  %s58_s15 = int_to_ptr.vmem [resolvable:$true] %s57_s15 }
  0x16   :  { %s843_s19 = scalar_lea.hbm %s1141_s2, 96 }
  0x17   :  { %p844_p8 = scmp.ne.s32.totalorder %s1141_s2, %s843_s19  ;;  %p847_p9 = scmp.lt.u32.totalorder %s843_s19, %s1141_s2 }
  0x19   :  { %p849_p10 = pnand %p847_p9, %p844_p8 }
  0x1b   :  { %852 = shalt.err (!%p849_p10)
}
  0x1c   :  { %s853_s5 = scalar_lea.vmem %s31_s13, 96  ;;  %p858_p12 = scmp.lt.s32.totalorder %s31_s13, %s31_s13 }
  0x1d   :  { %p854_p11 = scmp.ne.s32.totalorder %s31_s13, %s853_s5  ;;  %p859_p13 = scmp.lt.s32.totalorder %s853_s5, %s853_s5 }
  0x1f   :  { %p860_p0 = por %p859_p13, %p858_p12 }
  0x21   :  { %p861_p1 = pnand %p860_p0, %p854_p11 }
  0x23   :  { %864 = shalt.err (!%p861_p1)
}
  0x24   :  { %33 = dma.hbm_to_vmem [thread:$0]  %s1141_s2, 96, %s31_s13, [#allocation3]  }
  0x25   :  { %s865_s29 = scalar_lea.hbm %s1146_s7, 1024 }
  0x26   :  { %p866_p2 = scmp.ne.s32.totalorder %s1146_s7, %s865_s29  ;;  %p869_p3 = scmp.lt.u32.totalorder %s865_s29, %s1146_s7 }
  0x28   :  { %p871_p4 = pnand %p869_p3, %p866_p2 }
  0x2a   :  { %874 = shalt.err (!%p871_p4)
}
  0x2b   :  { %s875_s17 = scalar_lea.vmem %s58_s15, 1024  ;;  %p880_p6 = scmp.lt.s32.totalorder %s58_s15, %s58_s15 }
  0x2c   :  { %p876_p5 = scmp.ne.s32.totalorder %s58_s15, %s875_s17  ;;  %p881_p7 = scmp.lt.s32.totalorder %s875_s17, %s875_s17 }
  0x2e   :  { %p882_p8 = por %p881_p7, %p880_p6 }
  0x30   :  { %p883_p9 = pnand %p882_p8, %p876_p5 }
  0x32   :  { %886 = shalt.err (!%p883_p9)
}
  0x33   :  { %63 = dma.hbm_to_vmem [thread:$0]  %s1146_s7, 1024, %s58_s15, [#allocation6], %s940_s27, %s940_s27, %s941_s28  }
  0x34   :  { %s944_s19 = smov [#allocation8]   ;;  %s887_s23 = scalar_lea.hbm %s1148_s9, 1024 }
  0x35   :  { %s71_s20 = sshll.u32 %s944_s19, 4  ;;  %p888_p10 = scmp.ne.s32.totalorder %s1148_s9, %s887_s23  ;;  %s72_s20 = int_to_ptr.vmem [resolvable:$true] %s71_s20 }
  0x36   :  { %p891_p11 = scmp.lt.u32.totalorder %s887_s23, %s1148_s9 }
  0x38   :  { %p893_p12 = pnand %p891_p11, %p888_p10 }
  0x3a   :  { %896 = shalt.err (!%p893_p12)
}
  0x3b   :  { %s897_s26 = scalar_lea.vmem %s72_s20, 1024  ;;  %p902_p0 = scmp.lt.s32.totalorder %s72_s20, %s72_s20 }
  0x3c   :  { %p898_p13 = scmp.ne.s32.totalorder %s72_s20, %s897_s26  ;;  %p903_p1 = scmp.lt.s32.totalorder %s897_s26, %s897_s26 }
  0x3e   :  { %p904_p2 = por %p903_p1, %p902_p0 }
  0x40   :  { %p905_p3 = pnand %p904_p2, %p898_p13 }
  0x42   :  { %908 = shalt.err (!%p905_p3)
}
  0x43   :  { %77 = dma.hbm_to_vmem [thread:$0]  %s1148_s9, 1024, %s72_s20, [#allocation9], %s940_s27, %s940_s27, %s941_s28  }
  0x44   :  { %931 = dma.done.wait [#allocation3], 96  }
  0x45   :  { %932 = vsyncadd [#allocation3], 4294967200 }
  0x46   :  { %933 = dma.done.wait [#allocation6], 2048  }
  0x47   :  { %934 = vsyncadd [#allocation6], 4294965248 }
  0x48   :  { %935 = dma.done.wait [#allocation9], 1024  }
  0x49   :  { %936 = vsyncadd [#allocation9], 4294966272  ;;  %v103_v0 = vlaneseq  ;;  %v945_v1 = vmov 1983009808   ;;  %vm119_vm0 = vcmask 1040384   ;;  %v946_v4 = vmov 0  }
  0x4a   :  { %v101_v2 = vunpack.c.l.s4 %v945_v1  ;;  %164 = vmatprep.mubr.bf16.mxu0 %v946_v4  ;;  %v947_v6 = vmov 0.0   ;;  %vm948_vm1 = vmmov 0   ;;  %vm120_vm2 = vcmask 1041408   ;;  %v97_v10 = vld [vmem:[#allocation2] sm:$0x3f]  ;;  %v797_v15 = vld [vmem:[#allocation5] sm:$0xff]  }
  0x4b   :  { %v104_v3 = vshrl.u32 %v103_v0, 7  ;;  %723 = vmatprep.subr.bf16.mxu1 %v947_v6  ;;  %739 = vmatprep.mubr.msk.bf16.mxu1 %vm948_vm1, %v947_v6  ;;  %v949_v8 = vmov 65535   ;;  %v99_v11 = vcombine.high %v97_v10, %v97_v10  ;;  %v95_v14 = vld [vmem:[%s1140_s1] sm:$0xff]  ;;  %vm115_vm3 = vcmask 23552   ;;  %v798_v17 = vld [vmem:[#allocation5 + $0x8] sm:$0xff]   ;;  %v799_v26 = vld [vmem:[#allocation5 + $0x10] sm:$0xff]  }
  0x4c   :  { %v102_v5 = vunpack.c.0.s8 %v101_v2  ;;  %v121_v9 = vsel %vm119_vm0, 4294967295, %v949_v8  ;;  %724 = vmatpush3.bf16.msra.mxu1 %v797_v15  ;;  %v96_v21 = vpack.c.bf16 %v95_v14, %v95_v14  ;;  %v796_v23 = vld [vmem:[%s1142_s3] sm:$0xff]   ;;  %vm225_vm4 = vcmask 130048   ;;  %v802_v29 = vld [vmem:[#allocation5 + $0x28] sm:$0xff]   ;;  %v803_v30 = vld [vmem:[#allocation5 + $0x30] sm:$0xff]  }
  0x4d   :  { %v122_v13 = vsel %vm120_vm2, %v121_v9, 0  ;;  %725 = vmatprep.subr.bf16.mxu1 %v947_v6  ;;  %v93_v24 = vld [vmem:[%s1139_s0] sm:$0xff]  ;;  %v806_v33 = vld [vmem:[#allocation7 + $0x8] sm:$0xff]   ;;  %v807_v34 = vld [vmem:[#allocation7 + $0x10] sm:$0xff]  }
  0x4e   :  { %v105_v7 = vsub.s32 %v102_v5, %v104_v3  ;;  %v94_v25 = vpack.c.bf16 %v93_v24, %v93_v24  ;;  %v800_v27 = vld [vmem:[#allocation5 + $0x18] sm:$0xff]   ;;  %v801_v28 = vld [vmem:[#allocation5 + $0x20] sm:$0xff]   ;;  %v810_v37 = vld [vmem:[#allocation7 + $0x28] sm:$0xff]  }
  0x4f   :  { %v804_v31 = vld [vmem:[#allocation5 + $0x38] sm:$0xff]   ;;  %v805_v32 = vld [vmem:[#allocation7] sm:$0xff]   ;;  %v811_v57 = vld [vmem:[#allocation7 + $0x30] sm:$0xff]  }
  0x50   :  { %v106_v12 = vrot.slane %v97_v10, %v105_v7  ;;  %v113_v18 = vrot.slane %v99_v11, %v105_v7  ;;  %726 = vmatpush3.bf16.msra.mxu1 %v798_v17  ;;  %v808_v35 = vld [vmem:[#allocation7 + $0x18] sm:$0xff]   ;;  %v809_v36 = vld [vmem:[#allocation7 + $0x20] sm:$0xff]   ;;  %v814_v60 = vld [vmem:[#allocation8 + $0x8] sm:$0xff]  }
  0x51   :  { %727 = vmatprep.subr.bf16.mxu1 %v947_v6  ;;  %v651_v49 = vld [vmem:[%s1143_s4] ss:$0 sm:$0xff]  ;;  %v813_v59 = vld [vmem:[#allocation8] sm:$0xff]   ;;  %v815_v61 = vld [vmem:[#allocation8 + $0x10] sm:$0xff]  }
  0x52   :  { %v114_v16 = vcombine.high %v106_v12, %v106_v12  ;;  %v124_v19 = vand.u32 %v122_v13, %v106_v12  ;;  %v130_v22 = vand.u32 %v122_v13, %v113_v18  ;;  %v812_v58 = vld [vmem:[#allocation7 + $0x38] sm:$0xff]   ;;  %v817_v63 = vld [vmem:[#allocation8 + $0x20] sm:$0xff]   ;;  %v818_v0 = vld [vmem:[#allocation8 + $0x28] sm:$0xff]  }
  0x53   :  { %v816_v62 = vld [vmem:[#allocation8 + $0x18] sm:$0xff]  }
  0x54   :  { %v127_v20 = vand.u32 %v122_v13, %v114_v16  ;;  %728 = vmatpush3.bf16.msra.mxu1 %v799_v26  ;;  %v660_v4 = vld [vmem:[%s1145_s6] ss:$0 sm:$0xff]  ;;  %v819_v13 = vld [vmem:[#allocation8 + $0x30] sm:$0xff]  }
  0x55   :  { %729 = vmatprep.subr.bf16.mxu1 %v947_v6  ;;  %v820_v14 = vld [vmem:[#allocation8 + $0x38] sm:$0xff]  }
  0x56   :  { %132 = vmatprep.subr.bf16.mxu0 %v127_v20  ;;  %v669_v18 = vld [vmem:[%s1147_s8] ss:$0 sm:$0xff]  ;;  %s950_s8 = smov [#allocation10]  }
  0x57   :  { %133 = vmatpush1.bf16.msra.mxu0 %v124_v19  ;;  %s636_s2 = sshll.u32 %s950_s8, 4  ;;  %s637_s2 = int_to_ptr.vmem [resolvable:$true] %s636_s2 }
  0x58   :  { %711 = vmatprep.subr.bf16.mxu0 %v947_v6  ;;  %730 = vmatpush3.bf16.msra.mxu1 %v800_v27  ;;  %s909_s13 = scalar_lea.vmem %s637_s2, 64  ;;  %p914_p5 = scmp.lt.s32.totalorder %s637_s2, %s637_s2 }
  0x59   :  { %731 = vmatprep.subr.bf16.mxu1 %v947_v6  ;;  %p910_p4 = scmp.ne.s32.totalorder %s637_s2, %s909_s13  ;;  %p915_p6 = scmp.lt.s32.totalorder %s909_s13, %s909_s13 }
  0x5a   :  { %647 = vmatmul.mubr.msk.bf16.vlgmr.msra.gmra.mrb[0].mxu0 %vm115_vm3, %v96_v21 }
  0x5b   :  { %712 = vmatpush3.bf16.msra.mxu0 %v130_v22  ;;  %713 = vmatprep.mubr.msk.bf16.mxu0 %vm948_vm1, %v947_v6  ;;  %p916_p7 = por %p915_p6, %p914_p5 }
  0x5c   :  { %717 = vmatprep.subr.bf16.mxu0 %v947_v6  ;;  %732 = vmatpush3.bf16.msra.mxu1 %v801_v28 }
  0x5d   :  { %733 = vmatprep.subr.bf16.mxu1 %v947_v6  ;;  %p917_p8 = pnand %p916_p7, %p910_p4 }
  0x60   :  { %734 = vmatpush3.bf16.msra.mxu1 %v802_v29 }
  0x61   :  { %735 = vmatprep.subr.bf16.mxu1 %v947_v6 }
  0x62   :  { %714 = vmatmul.mubr.msk.bf16.vlgmr.msra.gmra.mrb[4].mxu0 %vm115_vm3, %v96_v21 }
  0x63   :  { %718 = vmatpush3.bf16.msra.mxu0 %v796_v23  ;;  %719 = vmatprep.mubr.msk.bf16.mxu0 %vm948_vm1, %v947_v6 }
  0x64   :  { %743 = vmatprep.subr.bf16.mxu0 %v947_v6  ;;  %736 = vmatpush3.bf16.msra.mxu1 %v803_v30 }
  0x65   :  { %737 = vmatprep.subr.bf16.mxu1 %v947_v6 }
  0x68   :  { %738 = vmatpush3.bf16.msra.mxu1 %v804_v31 }
  0x69   :  { %763 = vmatprep.subr.bf16.mxu1 %v947_v6 }
  0x6a   :  { %720 = vmatmul.mubr.msk.bf16.vlgmr.msra.gmra.mrb[8].mxu0 %vm225_vm4, %v94_v25 }
  0x6b   :  { %759 = vmatprep.mubr.msk.bf16.mxu0 %vm948_vm1, %v947_v6  ;;  %744 = vmatpush3.bf16.msra.mxu0 %v805_v32 }
  0x6c   :  { %745 = vmatprep.subr.bf16.mxu0 %v947_v6 }
  0x6f   :  { %746 = vmatpush3.bf16.msra.mxu0 %v806_v33 }
  0x70   :  { %747 = vmatprep.subr.bf16.mxu0 %v947_v6 }
  0x73   :  { %748 = vmatpush3.bf16.msra.mxu0 %v807_v34 }
  0x74   :  { %749 = vmatprep.subr.bf16.mxu0 %v947_v6 }
  0x77   :  { %750 = vmatpush3.bf16.msra.mxu0 %v808_v35 }
  0x78   :  { %751 = vmatprep.subr.bf16.mxu0 %v947_v6 }
  0x7b   :  { %752 = vmatpush3.bf16.msra.mxu0 %v809_v36 }
  0x7c   :  { %753 = vmatprep.subr.bf16.mxu0 %v947_v6 }
  0x7f   :  { %754 = vmatpush3.bf16.msra.mxu0 %v810_v37 }
  0x80   :  { %755 = vmatprep.subr.bf16.mxu0 %v947_v6 }
  0x83   :  { %756 = vmatpush3.bf16.msra.mxu0 %v811_v57 }
  0x84   :  { %757 = vmatprep.subr.bf16.mxu0 %v947_v6 }
  0x87   :  { %758 = vmatpush3.bf16.msra.mxu0 %v812_v58 }
 0x12d   :  { %v166_v38 = vpop.f32.mrb[0].mxu0 }
 0x12e   :  { %v168_v39 = vpop.f32.mrb[1].mxu0  ;;  %v213_v45 = vpack.c.bf16 %v166_v38, %v166_v38 }
 0x12f   :  { %v170_v40 = vpop.f32.mrb[2].mxu0  ;;  %v214_v1 = vpack.c.bf16 %v168_v39, %v168_v39 }
 0x130   :  { %v171_v41 = vpop.f32.mrb[3].mxu0  ;;  %v218_v47 = vunpack.c.l.bf16 %v213_v45 }
 0x131   :  { %v295_v2 = vunpack.c.l.bf16 %v214_v1 }
 0x135   :  { %v207_v42 = vpop.f32.mrb[4].mxu0 }
 0x136   :  { %v715_v43 = vpop.f32.mrb[5].mxu0  ;;  %v215_v15 = vpack.c.bf16 %v207_v42, %v207_v42 }
 0x137   :  { %v210_v44 = vpop.f32.mrb[6].mxu0 }
 0x138   :  { %v716_v46 = vpop.f32.mrb[7].mxu0  ;;  %v410_v16 = vunpack.c.l.bf16 %v215_v15 }
 0x13d   :  { %v263_v48 = vpop.f32.mrb[8].mxu0 }
 0x13e   :  { %v264_v50 = vadd.f32 %v263_v48, %v218_v47  ;;  %v721_v51 = vpop.f32.mrb[9].mxu0 }
 0x13f   :  { %v266_v52 = vpop.f32.mrb[10].mxu0 }
 0x140   :  { %v276_v53 = vadd.f32 %v651_v49, %v264_v50  ;;  %v722_v54 = vpop.f32.mrb[11].mxu0 }
 0x142   :  { %v277_v55 = vmax.f32 %v276_v53, 0.0 }
 0x144   :  { %v278_v56 = vpack.c.bf16 %v277_v55, %v277_v55 }
 0x146   :  { %740 = vmatmul.mubr.bf16.vlgmr.msra.gmra.mrb[0].mxu1 %v278_v56 }
 0x147   :  { %779 = vmatprep.mubr.msk.bf16.mxu1 %vm948_vm1, %v947_v6  ;;  %764 = vmatpush3.bf16.msra.mxu1 %v813_v59 }
 0x148   :  { %765 = vmatprep.subr.bf16.mxu1 %v947_v6 }
 0x14b   :  { %766 = vmatpush3.bf16.msra.mxu1 %v814_v60 }
 0x14c   :  { %767 = vmatprep.subr.bf16.mxu1 %v947_v6 }
 0x14f   :  { %768 = vmatpush3.bf16.msra.mxu1 %v815_v61 }
 0x150   :  { %769 = vmatprep.subr.bf16.mxu1 %v947_v6 }
 0x153   :  { %770 = vmatpush3.bf16.msra.mxu1 %v816_v62 }
 0x154   :  { %771 = vmatprep.subr.bf16.mxu1 %v947_v6 }
 0x157   :  { %772 = vmatpush3.bf16.msra.mxu1 %v817_v63 }
 0x158   :  { %773 = vmatprep.subr.bf16.mxu1 %v947_v6 }
 0x15b   :  { %774 = vmatpush3.bf16.msra.mxu1 %v818_v0 }
 0x15c   :  { %775 = vmatprep.subr.bf16.mxu1 %v947_v6 }
 0x15f   :  { %776 = vmatpush3.bf16.msra.mxu1 %v819_v13 }
 0x160   :  { %777 = vmatprep.subr.bf16.mxu1 %v947_v6  ;;  %v670_v6 = vld [vmem:[%s1149_s10] ss:$0 sm:$0xff] }
 0x163   :  { %778 = vmatpush3.bf16.msra.mxu1 %v820_v14 }
 0x219   :  { %v378_v3 = vpop.f32.mrb[0].mxu1 }
 0x21a   :  { %v379_v5 = vadd.f32 %v378_v3, %v295_v2  ;;  %v741_v7 = vpop.f32.mrb[1].mxu1 }
 0x21b   :  { %v381_v8 = vpop.f32.mrb[2].mxu1 }
 0x21c   :  { %v391_v9 = vadd.f32 %v660_v4, %v379_v5  ;;  %v742_v10 = vpop.f32.mrb[3].mxu1 }
 0x21e   :  { %v392_v11 = vmax.f32 %v391_v9, 0.0 }
 0x220   :  { %v393_v12 = vpack.c.bf16 %v392_v11, %v392_v11 }
 0x222   :  { %760 = vmatmul.mubr.bf16.vlgmr.msra.gmra.mrb[12].mxu0 %v393_v12 }
 0x2f5   :  { %v493_v17 = vpop.f32.mrb[12].mxu0 }
 0x2f6   :  { %v494_v19 = vadd.f32 %v493_v17, %v410_v16  ;;  %v761_v20 = vpop.f32.mrb[13].mxu0 }
 0x2f7   :  { %v496_v21 = vpop.f32.mrb[14].mxu0 }
 0x2f8   :  { %v506_v22 = vadd.f32 %v669_v18, %v494_v19  ;;  %v762_v23 = vpop.f32.mrb[15].mxu0 }
 0x2fa   :  { %v507_v24 = vmax.f32 %v506_v22, 0.0 }
 0x2fc   :  { %v508_v25 = vpack.c.bf16 %v507_v24, %v507_v24 }
 0x2fe   :  { %780 = vmatmul.mubr.bf16.vlgmr.msra.gmra.mrb[4].mxu1 %v508_v25 }
 0x3d1   :  { %v614_v26 = vpop.f32.mrb[4].mxu1 }
 0x3d2   :  { %v615_v27 = vadd.f32 %v670_v6, %v614_v26  ;;  %v781_v28 = vpop.f32.mrb[5].mxu1 }
 0x3d3   :  { %v617_v29 = vpop.f32.mrb[6].mxu1 }
 0x3d4   :  { %vm620_vm5 = vcmp.ne.f32.partialorder %v615_v27, %v615_v27  ;;  %v782_v30 = vpop.f32.mrb[7].mxu1 }
 0x3d5   :  { %v621_v31 = vsel %vm620_vm5, 0.0, %v615_v27 }
 0x3d6   :  { %vm622_vm6 = vcmp.eq.f32.partialorder %v621_v31, inf }
 0x3d7   :  { %v623_v32 = vsel %vm622_vm6, 3.3895314e+38, %v621_v31 }
 0x3d8   :  { %vm624_vm7 = vcmp.eq.f32.partialorder %v623_v32, -inf }
 0x3d9   :  { %v625_v33 = vsel %vm624_vm7, -3.3895314e+38, %v623_v32 }
 0x3da   :  { %v679_v34 = vclamps-f32 %v625_v33, 3.3895314e+38 }
 0x3dc   :  { %v628_v35 = vpack.c.bf16 %v679_v34, %v679_v34 }
 0x3de   :  { %629 = vst [vmem:[#allocation10] sm:$0xf] %v628_v35 }
 0x3df   :  { %920 = shalt.err (!%p917_p8)
}
 0x3e0   :  { %s921_s20 = scalar_lea.hbm %s1150_s11, 64 }
 0x3e1   :  { %p922_p9 = scmp.ne.s32.totalorder %s1150_s11, %s921_s20  ;;  %p925_p10 = scmp.lt.u32.totalorder %s921_s20, %s1150_s11 }
 0x3e3   :  { %p927_p11 = pnand %p925_p10, %p922_p9 }
 0x3e5   :  { %930 = shalt.err (!%p927_p11)
}
 0x3e6   :  { %639 = dma.vmem_to_hbm [thread:$0]  %s637_s2, 64, %s1150_s11, [#allocation4]  }
 0x3e7   :  { %937 = dma.done.wait [#allocation4], 64  }
 0x3e8   :  { %938 = vsyncadd [#allocation4], 4294967232 }
 0x3e9   :  { %643 = vsyncpa [#allocation3], 1 }
 0x3ea   :  { %644 = vsyncpa [#allocation6], 1 }
 0x3eb   :  { %645 = vsyncpa [#allocation9], 1 }
 0x3ec   :  { %646 = vsyncpa [#allocation4], 1 }

// kernel: tpu_custom_call.1
= control target key start
LH: loop header
LB: loop body
LE: loop exit
PB: predicated region body
PF: predicated region fallthrough
CT: control target
= control target key end

     0   :  { %16 = vsyncpa [#allocation3], 0  ;;  %s1139_s0 = inlined_call_operand.vmem [shape: f32[8,16], index: 0, kind: input, shape index: {}]   ;;  %s1140_s1 = inlined_call_operand.vmem [shape: f32[8,3], index: 1, kind: input, shape index: {}]   ;;  %s1141_s2 = inlined_call_operand.hbm [shape: bf16[3,384], index: 2, kind: input, shape index: {}]   ;;  %s1142_s3 = inlined_call_operand.vmem [shape: bf16[16,128], index: 3, kind: input, shape index: {}]   ;;  %s1143_s4 = inlined_call_operand.vmem [shape: f32[1,128], index: 4, kind: input, shape index: {}]   ;;  %s1144_s5 = inlined_call_operand.hbm [shape: bf16[128,128], index: 5, kind: input, shape index: {}]   ;;  %s1145_s6 = inlined_call_operand.vmem [shape: f32[1,128], index: 6, kind: input, shape index: {}]   ;;  %s1146_s7 = inlined_call_operand.hbm [shape: bf16[128,128], index: 7, kind: input, shape index: {}]   ;;  %s1147_s8 = inlined_call_operand.vmem [shape: f32[1,128], index: 8, kind: input, shape index: {}]   ;;  %s1148_s9 = inlined_call_operand.hbm [shape: bf16[128,128], index: 9, kind: input, shape index: {}]   ;;  %s1149_s10 = inlined_call_operand.vmem [shape: f32[1,128], index: 10, kind: input, shape index: {}]   ;;  %s1150_s11 = inlined_call_operand.hbm [shape: bf16[8,128], index: 11, kind: output, shape index: {}]  }
   0x1   :  { %17 = vsyncpa [#allocation6], 0 }
   0x2   :  { %18 = vsyncpa [#allocation9], 0 }
   0x3   :  { %19 = vsyncpa [#allocation4], 0  ;;  %s939_s17 = smov [#allocation5]   ;;  %s821_s21 = scalar_lea.hbm %s1144_s5, 1024 }
   0x4   :  { %s43_s18 = sshll.u32 %s939_s17, 4  ;;  %p822_p0 = scmp.ne.s32.totalorder %s1144_s5, %s821_s21  ;;  %s44_s18 = int_to_ptr.vmem [resolvable:$true] %s43_s18 }
   0x5   :  { %p825_p1 = scmp.lt.u32.totalorder %s821_s21, %s1144_s5 }
   0x7   :  { %p827_p2 = pnand %p825_p1, %p822_p0 }
   0x9   :  { %830 = shalt.err (!%p827_p2)
}
   0xa   :  { %s831_s26 = scalar_lea.vmem %s44_s18, 1024  ;;  %p836_p4 = scmp.lt.s32.totalorder %s44_s18, %s44_s18 }
   0xb   :  { %p832_p3 = scmp.ne.s32.totalorder %s44_s18, %s831_s26  ;;  %p837_p5 = scmp.lt.s32.totalorder %s831_s26, %s831_s26 }
   0xd   :  { %p838_p6 = por %p837_p5, %p836_p4 }
   0xf   :  { %p839_p7 = pnand %p838_p6, %p832_p3 }
  0x11   :  { %842 = shalt.err (!%p839_p7)
}
  0x12   :  { %s940_s27 = smov 64   ;;  %s941_s28 = smov 4  }
  0x13   :  { %49 = dma.hbm_to_vmem [thread:$0]  %s1144_s5, 1024, %s44_s18, [#allocation6], %s940_s27, %s940_s27, %s941_s28  }
  0x14   :  { %s942_s12 = smov [#allocation2]   ;;  %s943_s14 = smov [#allocation7]  }
  0x15   :  { %s30_s13 = sshll.u32 %s942_s12, 4  ;;  %s57_s15 = sshll.u32 %s943_s14, 4  ;;  %s31_s13 = int_to_ptr.vmem [resolvable:$true] %s30_s13  ;;  %s58_s15 = int_to_ptr.vmem [resolvable:$true] %s57_s15 }
  0x16   :  { %s843_s19 = scalar_lea.hbm %s1141_s2, 96 }
  0x17   :  { %p844_p8 = scmp.ne.s32.totalorder %s1141_s2, %s843_s19  ;;  %p847_p9 = scmp.lt.u32.totalorder %s843_s19, %s1141_s2 }
  0x19   :  { %p849_p10 = pnand %p847_p9, %p844_p8 }
  0x1b   :  { %852 = shalt.err (!%p849_p10)
}
  0x1c   :  { %s853_s5 = scalar_lea.vmem %s31_s13, 96  ;;  %p858_p12 = scmp.lt.s32.totalorder %s31_s13, %s31_s13 }
  0x1d   :  { %p854_p11 = scmp.ne.s32.totalorder %s31_s13, %s853_s5  ;;  %p859_p13 = scmp.lt.s32.totalorder %s853_s5, %s853_s5 }
  0x1f   :  { %p860_p0 = por %p859_p13, %p858_p12 }
  0x21   :  { %p861_p1 = pnand %p860_p0, %p854_p11 }
  0x23   :  { %864 = shalt.err (!%p861_p1)
}
  0x24   :  { %33 = dma.hbm_to_vmem [thread:$0]  %s1141_s2, 96, %s31_s13, [#allocation3]  }
  0x25   :  { %s865_s29 = scalar_lea.hbm %s1146_s7, 1024 }
  0x26   :  { %p866_p2 = scmp.ne.s32.totalorder %s1146_s7, %s865_s29  ;;  %p869_p3 = scmp.lt.u32.totalorder %s865_s29, %s1146_s7 }
  0x28   :  { %p871_p4 = pnand %p869_p3, %p866_p2 }
  0x2a   :  { %874 = shalt.err (!%p871_p4)
}
  0x2b   :  { %s875_s17 = scalar_lea.vmem %s58_s15, 1024  ;;  %p880_p6 = scmp.lt.s32.totalorder %s58_s15, %s58_s15 }
  0x2c   :  { %p876_p5 = scmp.ne.s32.totalorder %s58_s15, %s875_s17  ;;  %p881_p7 = scmp.lt.s32.totalorder %s875_s17, %s875_s17 }
  0x2e   :  { %p882_p8 = por %p881_p7, %p880_p6 }
  0x30   :  { %p883_p9 = pnand %p882_p8, %p876_p5 }
  0x32   :  { %886 = shalt.err (!%p883_p9)
}
  0x33   :  { %63 = dma.hbm_to_vmem [thread:$0]  %s1146_s7, 1024, %s58_s15, [#allocation6], %s940_s27, %s940_s27, %s941_s28  }
  0x34   :  { %s944_s19 = smov [#allocation8]   ;;  %s887_s23 = scalar_lea.hbm %s1148_s9, 1024 }
  0x35   :  { %s71_s20 = sshll.u32 %s944_s19, 4  ;;  %p888_p10 = scmp.ne.s32.totalorder %s1148_s9, %s887_s23  ;;  %s72_s20 = int_to_ptr.vmem [resolvable:$true] %s71_s20 }
  0x36   :  { %p891_p11 = scmp.lt.u32.totalorder %s887_s23, %s1148_s9 }
  0x38   :  { %p893_p12 = pnand %p891_p11, %p888_p10 }
  0x3a   :  { %896 = shalt.err (!%p893_p12)
}
  0x3b   :  { %s897_s26 = scalar_lea.vmem %s72_s20, 1024  ;;  %p902_p0 = scmp.lt.s32.totalorder %s72_s20, %s72_s20 }
  0x3c   :  { %p898_p13 = scmp.ne.s32.totalorder %s72_s20, %s897_s26  ;;  %p903_p1 = scmp.lt.s32.totalorder %s897_s26, %s897_s26 }
  0x3e   :  { %p904_p2 = por %p903_p1, %p902_p0 }
  0x40   :  { %p905_p3 = pnand %p904_p2, %p898_p13 }
  0x42   :  { %908 = shalt.err (!%p905_p3)
}
  0x43   :  { %77 = dma.hbm_to_vmem [thread:$0]  %s1148_s9, 1024, %s72_s20, [#allocation9], %s940_s27, %s940_s27, %s941_s28  }
  0x44   :  { %931 = dma.done.wait [#allocation3], 96  }
  0x45   :  { %932 = vsyncadd [#allocation3], 4294967200 }
  0x46   :  { %933 = dma.done.wait [#allocation6], 2048  }
  0x47   :  { %934 = vsyncadd [#allocation6], 4294965248 }
  0x48   :  { %935 = dma.done.wait [#allocation9], 1024  }
  0x49   :  { %936 = vsyncadd [#allocation9], 4294966272  ;;  %v103_v0 = vlaneseq  ;;  %v945_v1 = vmov 1983009808   ;;  %vm119_vm0 = vcmask 1040384   ;;  %v946_v4 = vmov 0  }
  0x4a   :  { %v101_v2 = vunpack.c.l.s4 %v945_v1  ;;  %164 = vmatprep.mubr.bf16.mxu0 %v946_v4  ;;  %v947_v6 = vmov 0.0   ;;  %vm948_vm1 = vmmov 0   ;;  %vm120_vm2 = vcmask 1041408   ;;  %v97_v10 = vld [vmem:[#allocation2] sm:$0x3f]  ;;  %v797_v15 = vld [vmem:[#allocation5] sm:$0xff]  }
  0x4b   :  { %v104_v3 = vshrl.u32 %v103_v0, 7  ;;  %723 = vmatprep.subr.bf16.mxu1 %v947_v6  ;;  %739 = vmatprep.mubr.msk.bf16.mxu1 %vm948_vm1, %v947_v6  ;;  %v949_v8 = vmov 65535   ;;  %v99_v11 = vcombine.high %v97_v10, %v97_v10  ;;  %v95_v14 = vld [vmem:[%s1140_s1] sm:$0xff]  ;;  %vm115_vm3 = vcmask 23552   ;;  %v798_v17 = vld [vmem:[#allocation5 + $0x8] sm:$0xff]   ;;  %v799_v26 = vld [vmem:[#allocation5 + $0x10] sm:$0xff]  }
  0x4c   :  { %v102_v5 = vunpack.c.0.s8 %v101_v2  ;;  %v121_v9 = vsel %vm119_vm0, 4294967295, %v949_v8  ;;  %724 = vmatpush3.bf16.msra.mxu1 %v797_v15  ;;  %v96_v21 = vpack.c.bf16 %v95_v14, %v95_v14  ;;  %v796_v23 = vld [vmem:[%s1142_s3] sm:$0xff]   ;;  %vm225_vm4 = vcmask 130048   ;;  %v802_v29 = vld [vmem:[#allocation5 + $0x28] sm:$0xff]   ;;  %v803_v30 = vld [vmem:[#allocation5 + $0x30] sm:$0xff]  }
  0x4d   :  { %v122_v13 = vsel %vm120_vm2, %v121_v9, 0  ;;  %725 = vmatprep.subr.bf16.mxu1 %v947_v6  ;;  %v93_v24 = vld [vmem:[%s1139_s0] sm:$0xff]  ;;  %v806_v33 = vld [vmem:[#allocation7 + $0x8] sm:$0xff]   ;;  %v807_v34 = vld [vmem:[#allocation7 + $0x10] sm:$0xff]  }
  0x4e   :  { %v105_v7 = vsub.s32 %v102_v5, %v104_v3  ;;  %v94_v25 = vpack.c.bf16 %v93_v24, %v93_v24  ;;  %v800_v27 = vld [vmem:[#allocation5 + $0x18] sm:$0xff]   ;;  %v801_v28 = vld [vmem:[#allocation5 + $0x20] sm:$0xff]   ;;  %v810_v37 = vld [vmem:[#allocation7 + $0x28] sm:$0xff]  }
  0x4f   :  { %v804_v31 = vld [vmem:[#allocation5 + $0x38] sm:$0xff]   ;;  %v805_v32 = vld [vmem:[#allocation7] sm:$0xff]   ;;  %v811_v57 = vld [vmem:[#allocation7 + $0x30] sm:$0xff]  }
  0x50   :  { %v106_v12 = vrot.slane %v97_v10, %v105_v7  ;;  %v113_v18 = vrot.slane %v99_v11, %v105_v7  ;;  %726 = vmatpush3.bf16.msra.mxu1 %v798_v17  ;;  %v808_v35 = vld [vmem:[#allocation7 + $0x18] sm:$0xff]   ;;  %v809_v36 = vld [vmem:[#allocation7 + $0x20] sm:$0xff]   ;;  %v814_v60 = vld [vmem:[#allocation8 + $0x8] sm:$0xff]  }
  0x51   :  { %727 = vmatprep.subr.bf16.mxu1 %v947_v6  ;;  %v651_v49 = vld [vmem:[%s1143_s4] ss:$0 sm:$0xff]  ;;  %v813_v59 = vld [vmem:[#allocation8] sm:$0xff]   ;;  %v815_v61 = vld [vmem:[#allocation8 + $0x10] sm:$0xff]  }
  0x52   :  { %v114_v16 = vcombine.high %v106_v12, %v106_v12  ;;  %v124_v19 = vand.u32 %v122_v13, %v106_v12  ;;  %v130_v22 = vand.u32 %v122_v13, %v113_v18  ;;  %v812_v58 = vld [vmem:[#allocation7 + $0x38] sm:$0xff]   ;;  %v817_v63 = vld [vmem:[#allocation8 + $0x20] sm:$0xff]   ;;  %v818_v0 = vld [vmem:[#allocation8 + $0x28] sm:$0xff]  }
  0x53   :  { %v816_v62 = vld [vmem:[#allocation8 + $0x18] sm:$0xff]  }
  0x54   :  { %v127_v20 = vand.u32 %v122_v13, %v114_v16  ;;  %728 = vmatpush3.bf16.msra.mxu1 %v799_v26  ;;  %v660_v4 = vld [vmem:[%s1145_s6] ss:$0 sm:$0xff]  ;;  %v819_v13 = vld [vmem:[#allocation8 + $0x30] sm:$0xff]  }
  0x55   :  { %729 = vmatprep.subr.bf16.mxu1 %v947_v6  ;;  %v820_v14 = vld [vmem:[#allocation8 + $0x38] sm:$0xff]  }
  0x56   :  { %132 = vmatprep.subr.bf16.mxu0 %v127_v20  ;;  %v669_v18 = vld [vmem:[%s1147_s8] ss:$0 sm:$0xff]  ;;  %s950_s8 = smov [#allocation10]  }
  0x57   :  { %133 = vmatpush1.bf16.msra.mxu0 %v124_v19  ;;  %s636_s2 = sshll.u32 %s950_s8, 4  ;;  %s637_s2 = int_to_ptr.vmem [resolvable:$true] %s636_s2 }
  0x58   :  { %711 = vmatprep.subr.bf16.mxu0 %v947_v6  ;;  %730 = vmatpush3.bf16.msra.mxu1 %v800_v27  ;;  %s909_s13 = scalar_lea.vmem %s637_s2, 64  ;;  %p914_p5 = scmp.lt.s32.totalorder %s637_s2, %s637_s2 }
  0x59   :  { %731 = vmatprep.subr.bf16.mxu1 %v947_v6  ;;  %p910_p4 = scmp.ne.s32.totalorder %s637_s2, %s909_s13  ;;  %p915_p6 = scmp.lt.s32.totalorder %s909_s13, %s909_s13 }
  0x5a   :  { %647 = vmatmul.mubr.msk.bf16.vlgmr.msra.gmra.mrb[0].mxu0 %vm115_vm3, %v96_v21 }
  0x5b   :  { %712 = vmatpush3.bf16.msra.mxu0 %v130_v22  ;;  %713 = vmatprep.mubr.msk.bf16.mxu0 %vm948_vm1, %v947_v6  ;;  %p916_p7 = por %p915_p6, %p914_p5 }
  0x5c   :  { %717 = vmatprep.subr.bf16.mxu0 %v947_v6  ;;  %732 = vmatpush3.bf16.msra.mxu1 %v801_v28 }
  0x5d   :  { %733 = vmatprep.subr.bf16.mxu1 %v947_v6  ;;  %p917_p8 = pnand %p916_p7, %p910_p4 }
  0x60   :  { %734 = vmatpush3.bf16.msra.mxu1 %v802_v29 }
  0x61   :  { %735 = vmatprep.subr.bf16.mxu1 %v947_v6 }
  0x62   :  { %714 = vmatmul.mubr.msk.bf16.vlgmr.msra.gmra.mrb[4].mxu0 %vm115_vm3, %v96_v21 }
  0x63   :  { %718 = vmatpush3.bf16.msra.mxu0 %v796_v23  ;;  %719 = vmatprep.mubr.msk.bf16.mxu0 %vm948_vm1, %v947_v6 }
  0x64   :  { %743 = vmatprep.subr.bf16.mxu0 %v947_v6  ;;  %736 = vmatpush3.bf16.msra.mxu1 %v803_v30 }
  0x65   :  { %737 = vmatprep.subr.bf16.mxu1 %v947_v6 }
  0x68   :  { %738 = vmatpush3.bf16.msra.mxu1 %v804_v31 }
  0x69   :  { %763 = vmatprep.subr.bf16.mxu1 %v947_v6 }
  0x6a   :  { %720 = vmatmul.mubr.msk.bf16.vlgmr.msra.gmra.mrb[8].mxu0 %vm225_vm4, %v94_v25 }
  0x6b   :  { %759 = vmatprep.mubr.msk.bf16.mxu0 %vm948_vm1, %v947_v6  ;;  %744 = vmatpush3.bf16.msra.mxu0 %v805_v32 }
  0x6c   :  { %745 = vmatprep.subr.bf16.mxu0 %v947_v6 }
  0x6f   :  { %746 = vmatpush3.bf16.msra.mxu0 %v806_v33 }
  0x70   :  { %747 = vmatprep.subr.bf16.mxu0 %v947_v6 }
  0x73   :  { %748 = vmatpush3.bf16.msra.mxu0 %v807_v34 }
  0x74   :  { %749 = vmatprep.subr.bf16.mxu0 %v947_v6 }
  0x77   :  { %750 = vmatpush3.bf16.msra.mxu0 %v808_v35 }
  0x78   :  { %751 = vmatprep.subr.bf16.mxu0 %v947_v6 }
  0x7b   :  { %752 = vmatpush3.bf16.msra.mxu0 %v809_v36 }
  0x7c   :  { %753 = vmatprep.subr.bf16.mxu0 %v947_v6 }
  0x7f   :  { %754 = vmatpush3.bf16.msra.mxu0 %v810_v37 }
  0x80   :  { %755 = vmatprep.subr.bf16.mxu0 %v947_v6 }
  0x83   :  { %756 = vmatpush3.bf16.msra.mxu0 %v811_v57 }
  0x84   :  { %757 = vmatprep.subr.bf16.mxu0 %v947_v6 }
  0x87   :  { %758 = vmatpush3.bf16.msra.mxu0 %v812_v58 }
 0x12d   :  { %v166_v38 = vpop.f32.mrb[0].mxu0 }
 0x12e   :  { %v168_v39 = vpop.f32.mrb[1].mxu0  ;;  %v213_v45 = vpack.c.bf16 %v166_v38, %v166_v38 }
 0x12f   :  { %v170_v40 = vpop.f32.mrb[2].mxu0  ;;  %v214_v1 = vpack.c.bf16 %v168_v39, %v168_v39 }
 0x130   :  { %v171_v41 = vpop.f32.mrb[3].mxu0  ;;  %v218_v47 = vunpack.c.l.bf16 %v213_v45 }
 0x131   :  { %v295_v2 = vunpack.c.l.bf16 %v214_v1 }
 0x135   :  { %v207_v42 = vpop.f32.mrb[4].mxu0 }
 0x136   :  { %v715_v43 = vpop.f32.mrb[5].mxu0  ;;  %v215_v15 = vpack.c.bf16 %v207_v42, %v207_v42 }
 0x137   :  { %v210_v44 = vpop.f32.mrb[6].mxu0 }
 0x138   :  { %v716_v46 = vpop.f32.mrb[7].mxu0  ;;  %v410_v16 = vunpack.c.l.bf16 %v215_v15 }
 0x13d   :  { %v263_v48 = vpop.f32.mrb[8].mxu0 }
 0x13e   :  { %v264_v50 = vadd.f32 %v263_v48, %v218_v47  ;;  %v721_v51 = vpop.f32.mrb[9].mxu0 }
 0x13f   :  { %v266_v52 = vpop.f32.mrb[10].mxu0 }
 0x140   :  { %v276_v53 = vadd.f32 %v651_v49, %v264_v50  ;;  %v722_v54 = vpop.f32.mrb[11].mxu0 }
 0x142   :  { %v277_v55 = vmax.f32 %v276_v53, 0.0 }
 0x144   :  { %v278_v56 = vpack.c.bf16 %v277_v55, %v277_v55 }
 0x146   :  { %740 = vmatmul.mubr.bf16.vlgmr.msra.gmra.mrb[0].mxu1 %v278_v56 }
 0x147   :  { %779 = vmatprep.mubr.msk.bf16.mxu1 %vm948_vm1, %v947_v6  ;;  %764 = vmatpush3.bf16.msra.mxu1 %v813_v59 }
 0x148   :  { %765 = vmatprep.subr.bf16.mxu1 %v947_v6 }
 0x14b   :  { %766 = vmatpush3.bf16.msra.mxu1 %v814_v60 }
 0x14c   :  { %767 = vmatprep.subr.bf16.mxu1 %v947_v6 }
 0x14f   :  { %768 = vmatpush3.bf16.msra.mxu1 %v815_v61 }
 0x150   :  { %769 = vmatprep.subr.bf16.mxu1 %v947_v6 }
 0x153   :  { %770 = vmatpush3.bf16.msra.mxu1 %v816_v62 }
 0x154   :  { %771 = vmatprep.subr.bf16.mxu1 %v947_v6 }
 0x157   :  { %772 = vmatpush3.bf16.msra.mxu1 %v817_v63 }
 0x158   :  { %773 = vmatprep.subr.bf16.mxu1 %v947_v6 }
 0x15b   :  { %774 = vmatpush3.bf16.msra.mxu1 %v818_v0 }
 0x15c   :  { %775 = vmatprep.subr.bf16.mxu1 %v947_v6 }
 0x15f   :  { %776 = vmatpush3.bf16.msra.mxu1 %v819_v13 }
 0x160   :  { %777 = vmatprep.subr.bf16.mxu1 %v947_v6  ;;  %v670_v6 = vld [vmem:[%s1149_s10] ss:$0 sm:$0xff] }
 0x163   :  { %778 = vmatpush3.bf16.msra.mxu1 %v820_v14 }
 0x219   :  { %v378_v3 = vpop.f32.mrb[0].mxu1 }
 0x21a   :  { %v379_v5 = vadd.f32 %v378_v3, %v295_v2  ;;  %v741_v7 = vpop.f32.mrb[1].mxu1 }
 0x21b   :  { %v381_v8 = vpop.f32.mrb[2].mxu1 }
 0x21c   :  { %v391_v9 = vadd.f32 %v660_v4, %v379_v5  ;;  %v742_v10 = vpop.f32.mrb[3].mxu1 }
 0x21e   :  { %v392_v11 = vmax.f32 %v391_v9, 0.0 }
 0x220   :  { %v393_v12 = vpack.c.bf16 %v392_v11, %v392_v11 }
 0x222   :  { %760 = vmatmul.mubr.bf16.vlgmr.msra.gmra.mrb[12].mxu0 %v393_v12 }
 0x2f5   :  { %v493_v17 = vpop.f32.mrb[12].mxu0 }
 0x2f6   :  { %v494_v19 = vadd.f32 %v493_v17, %v410_v16  ;;  %v761_v20 = vpop.f32.mrb[13].mxu0 }
 0x2f7   :  { %v496_v21 = vpop.f32.mrb[14].mxu0 }
 0x2f8   :  { %v506_v22 = vadd.f32 %v669_v18, %v494_v19  ;;  %v762_v23 = vpop.f32.mrb[15].mxu0 }
 0x2fa   :  { %v507_v24 = vmax.f32 %v506_v22, 0.0 }
 0x2fc   :  { %v508_v25 = vpack.c.bf16 %v507_v24, %v507_v24 }
 0x2fe   :  { %780 = vmatmul.mubr.bf16.vlgmr.msra.gmra.mrb[4].mxu1 %v508_v25 }
 0x3d1   :  { %v614_v26 = vpop.f32.mrb[4].mxu1 }
 0x3d2   :  { %v615_v27 = vadd.f32 %v670_v6, %v614_v26  ;;  %v781_v28 = vpop.f32.mrb[5].mxu1 }
 0x3d3   :  { %v617_v29 = vpop.f32.mrb[6].mxu1 }
 0x3d4   :  { %vm620_vm5 = vcmp.ne.f32.partialorder %v615_v27, %v615_v27  ;;  %v782_v30 = vpop.f32.mrb[7].mxu1 }
 0x3d5   :  { %v621_v31 = vsel %vm620_vm5, 0.0, %v615_v27 }
 0x3d6   :  { %vm622_vm6 = vcmp.eq.f32.partialorder %v621_v31, inf }
 0x3d7   :  { %v623_v32 = vsel %vm622_vm6, 3.3895314e+38, %v621_v31 }
 0x3d8   :  { %vm624_vm7 = vcmp.eq.f32.partialorder %v623_v32, -inf }
 0x3d9   :  { %v625_v33 = vsel %vm624_vm7, -3.3895314e+38, %v623_v32 }
 0x3da   :  { %v679_v34 = vclamps-f32 %v625_v33, 3.3895314e+38 }
 0x3dc   :  { %v628_v35 = vpack.c.bf16 %v679_v34, %v679_v34 }
 0x3de   :  { %629 = vst [vmem:[#allocation10] sm:$0xf] %v628_v35 }
 0x3df   :  { %920 = shalt.err (!%p917_p8)
}
 0x3e0   :  { %s921_s20 = scalar_lea.hbm %s1150_s11, 64 }
 0x3e1   :  { %p922_p9 = scmp.ne.s32.totalorder %s1150_s11, %s921_s20  ;;  %p925_p10 = scmp.lt.u32.totalorder %s921_s20, %s1150_s11 }
 0x3e3   :  { %p927_p11 = pnand %p925_p10, %p922_p9 }
 0x3e5   :  { %930 = shalt.err (!%p927_p11)
}
 0x3e6   :  { %639 = dma.vmem_to_hbm [thread:$0]  %s637_s2, 64, %s1150_s11, [#allocation4]  }
 0x3e7   :  { %937 = dma.done.wait [#allocation4], 64  }
 0x3e8   :  { %938 = vsyncadd [#allocation4], 4294967232 }
 0x3e9   :  { %643 = vsyncpa [#allocation3], 1 }
 0x3ea   :  { %644 = vsyncpa [#allocation6], 1 }
 0x3eb   :  { %645 = vsyncpa [#allocation9], 1 }
 0x3ec   :  { %646 = vsyncpa [#allocation4], 1 }

</bundles_post_ra>
